<compile_context>
chip_gen: v5e
topology: v5e:2x2
jax: 0.10.0
libtpu: 0.0.40
codegen_flags: <defaults>
</compile_context>

<pallas_src>
import numpy as np
import jax
import jax.numpy as jnp
from jax.experimental import pallas as pl
from jax.experimental.pallas import tpu as pltpu


def _round_up(x, m):
    return ((x + m - 1) // m) * m


def _cdiv(a, b):
    return (a + b - 1) // b


# ----------------------------------------------------------------------------
# Host-side (numpy) parameter construction: librosa slaney mel filterbank,
# periodic hann window, windowed real-DFT matrices.
# ----------------------------------------------------------------------------
def _hz_to_mel(f):
    f = np.asarray(f, dtype=np.float64)
    f_sp = 200.0 / 3.0
    mels = f / f_sp
    min_log_hz = 1000.0
    min_log_mel = min_log_hz / f_sp
    logstep = np.log(6.4) / 27.0
    return np.where(
        f >= min_log_hz,
        min_log_mel + np.log(np.maximum(f, min_log_hz) / min_log_hz) / logstep,
        mels,
    )


def _mel_to_hz(m):
    m = np.asarray(m, dtype=np.float64)
    f_sp = 200.0 / 3.0
    freqs = f_sp * m
    min_log_hz = 1000.0
    min_log_mel = min_log_hz / f_sp
    logstep = np.log(6.4) / 27.0
    return np.where(
        m >= min_log_mel,
        min_log_hz * np.exp(logstep * (m - min_log_mel)),
        freqs,
    )


def mel_filterbank(sr, n_fft, n_mels, fmin, fmax):
    """Equivalent of librosa.filters.mel (htk=False, norm='slaney')."""
    n_freq = n_fft // 2 + 1
    fftfreqs = np.linspace(0.0, sr / 2.0, n_freq)
    mel_pts = _mel_to_hz(np.linspace(_hz_to_mel(fmin), _hz_to_mel(fmax), n_mels + 2))
    fdiff = np.diff(mel_pts)
    ramps = mel_pts[:, None] - fftfreqs[None, :]
    lower = -ramps[:-2] / fdiff[:-1, None]
    upper = ramps[2:] / fdiff[1:, None]
    weights = np.maximum(0.0, np.minimum(lower, upper))
    enorm = 2.0 / (mel_pts[2 : n_mels + 2] - mel_pts[:n_mels])
    weights = weights * enorm[:, None]
    return weights.astype(np.float32)  # (n_mels, n_freq)


def dft_matrices_T(n_fft, win_length):
    """Windowed real-DFT matrices, transposed: (n_freq, n_fft) each."""
    n = np.arange(n_fft, dtype=np.float64)
    # torch.hann_window(win_size) default periodic=True
    window = 0.5 - 0.5 * np.cos(2.0 * np.pi * np.arange(win_length) / win_length)
    if win_length < n_fft:  # torch pads the window to n_fft, centered
        lp = (n_fft - win_length) // 2
        window = np.pad(window, (lp, n_fft - win_length - lp))
    k = np.arange(n_fft // 2 + 1, dtype=np.float64)
    ang = 2.0 * np.pi * k[:, None] * n[None, :] / n_fft  # (n_freq, n_fft)
    cos_t = (np.cos(ang) * window[None, :]).astype(np.float32)
    sin_t = (-np.sin(ang) * window[None, :]).astype(np.float32)
    return cos_t, sin_t


# ----------------------------------------------------------------------------
# Pallas kernel factory: one (batch, frame-tile) block -> (n_mels, tile_t).
# ----------------------------------------------------------------------------
def _make_mel_kernel(hop, r, nf, chunk, n_chunks):
    def kernel(yt_ref, cs_ref, mw_ref, out_ref):
        # yt_ref : (hop, W)          bf16  hop-strided audio (frame idx in lanes)
        # cs_ref : (2*nf, r*hop)     bf16  [cos; sin] * window, freq truncated
        # mw_ref : (n_mels, nf)      f32   mel filterbank
        # out_ref: (n_mels, tile_t)  f32   log-mel output tile
        #
        # Fully-unrolled chunking over `chunk`-wide (128/256-lane) column
        # sub-tiles: the mag/mel/log epilogue of chunk c overlaps the DFT
        # matmul pushes of chunk c+1 (MXU vs EUP/VPU/vst slots), and all
        # intermediates stay small (no big VMEM temp for reim).
        for c in range(n_chunks):
            col0 = c * chunk
            acc = None
            # In-kernel framing: frame t, sample j*hop+m  ==  yt[m, t + j],
            # so the windowed real DFT is the sum of r shifted hop-wide
            # sub-matmuls, accumulated in f32 (exact bf16 products on MXU).
            for j in range(r):
                blk = yt_ref[:, col0 + j : col0 + j + chunk]            # (hop, chunk)
                part = jnp.dot(
                    cs_ref[:, j * hop : (j + 1) * hop],
                    blk,
                    preferred_element_type=jnp.float32,
                )                                                       # (2nf, chunk)
                acc = part if acc is None else acc + part
            re = acc[:nf]
            im = acc[nf:]
            mag = jnp.sqrt(re * re + im * im + 1e-9)                    # (nf, chunk)
            # Mel matmul + epilogue kept in f32 (small vs. the DFT; v5e has no
            # bf16 VPU/EUP and the 1e-5 log clamp is accuracy sensitive).
            mel = jnp.dot(mw_ref[...], mag, preferred_element_type=jnp.float32)
            out_ref[:, col0 : col0 + chunk] = jnp.log(jnp.maximum(mel, 1e-5))

    return kernel


class MelSpectrogramFeatures1:
    def __init__(self, sample_rate=24000, n_fft=1024, hop_length=256,
                 win_length=1024, n_mels=80, mel_fmin=0, mel_fmax=8000,
                 normalize=False, padding="center", tile_t=2048):
        # Matches torch: `padding` is validated, but forward() always uses the
        # fixed (n_fft - hop)//2 reflect pad with center=False.
        if padding not in ["center", "same"]:
            raise ValueError("Padding must be 'center' or 'same'.")
        self.padding = padding
        self.sampling_rate = sample_rate
        self.n_fft = n_fft
        self.num_mels = n_mels
        self.hop_size = hop_length
        self.win_size = win_length
        self.fmin = mel_fmin
        self.fmax = mel_fmax if mel_fmax is not None else sample_rate / 2.0
        self.normalize = normalize
        self.tile_t = max(128, _round_up(int(tile_t), 128))

        # r shifted hop-wide sub-matmuls per frame; cossin columns are padded
        # (with zeros) from n_fft to r*hop so the decomposition is exact even
        # when hop does not divide n_fft.
        self.r = _cdiv(n_fft, hop_length)
        self.n_fft_k = self.r * hop_length

        n_freq = n_fft // 2 + 1
        mel_full = mel_filterbank(sample_rate, n_fft, n_mels, mel_fmin, self.fmax)
        cos_full, sin_full = dft_matrices_T(n_fft, win_length)  # (n_freq, n_fft)
        # Full-precision copies for the f32 reference used in the self-test.
        self._mel_full = mel_full
        self._cos_full = cos_full
        self._sin_full = sin_full

        # Truncate the frequency axis to the mel-covered band, rounded up to a
        # multiple of 128 (numerically exact: dropped bins have zero mel
        # weight; padded rows have zero DFT coeffs AND zero mel weight).
        nz = np.nonzero(np.any(mel_full > 0.0, axis=0))[0]
        last = int(nz[-1]) + 1 if nz.size else 1
        nf = _round_up(last, 128)
        if nf <= n_freq:
            cos_k, sin_k, mel_k = cos_full[:nf], sin_full[:nf], mel_full[:, :nf]
        else:
            extra = nf - n_freq
            cos_k = np.pad(cos_full, ((0, extra), (0, 0)))
            sin_k = np.pad(sin_full, ((0, extra), (0, 0)))
            mel_k = np.pad(mel_full, ((0, 0), (0, extra)))
        self.n_freq_trunc = nf

        if self.n_fft_k > n_fft:  # zero columns for the padded frame span
            padc = self.n_fft_k - n_fft
            cos_k = np.pad(cos_k, ((0, 0), (0, padc)))
            sin_k = np.pad(sin_k, ((0, 0), (0, padc)))

        # bf16 DFT operand (MXU-native), f32 mel weights.
        self.cossin = jnp.asarray(np.concatenate([cos_k, sin_k], axis=0),
                                  dtype=jnp.bfloat16)            # (2*nf, r*hop)
        self.mel_w = jnp.asarray(mel_k, dtype=jnp.float32)       # (n_mels, nf)

    # ----- shared padding / frame-count logic --------------------------------
    def _pad_reflect(self, audio):
        audio = jnp.asarray(audio, jnp.float32)
        p = (self.n_fft - self.hop_size) // 2
        # torch F.pad(..., mode='reflect') requires p < L (very short clips
        # fail in torch too).
        y = jnp.pad(audio, ((0, 0), (p, p)), mode="reflect")
        T = 1 + (y.shape[1] - self.n_fft) // self.hop_size
        return y, T

    # ----- pure-JAX references (test only) ------------------------------------
    def _frames_f32(self, audio):
        y, T = self._pad_reflect(audio)
        idx = (jnp.arange(self.n_fft)[:, None]
               + jnp.arange(T)[None, :] * self.hop_size)
        return y[:, idx], T                                       # (B, n_fft, T)

    def reference_quantized(self, audio):
        """Reference using the same bf16-quantized audio / DFT basis as kernel."""
        hi = jax.lax.Precision.HIGHEST
        frames, _ = self._frames_f32(audio)
        fq = frames.astype(jnp.bfloat16).astype(jnp.float32)
        cs = self.cossin[:, : self.n_fft].astype(jnp.float32)
        reim = jnp.einsum("ck,bkt->bct", cs, fq, precision=hi)
        nf = self.n_freq_trunc
        re, im = reim[:, :nf], reim[:, nf:]
        mag = jnp.sqrt(re * re + im * im + 1e-9)
        mel = jnp.einsum("mc,bct->bmt", self.mel_w, mag, precision=hi)
        return jnp.log(jnp.maximum(mel, 1e-5))

    def reference_f32(self, audio):
        """Full-precision (f32) reference of the torch pipeline."""
        hi = jax.lax.Precision.HIGHEST
        frames, _ = self._frames_f32(audio)
        re = jnp.einsum("fk,bkt->bft", jnp.asarray(self._cos_full), frames, precision=hi)
        im = jnp.einsum("fk,bkt->bft", jnp.asarray(self._sin_full), frames, precision=hi)
        mag = jnp.sqrt(re * re + im * im + 1e-9)
        mel = jnp.einsum("mf,bft->bmt", jnp.asarray(self._mel_full), mag, precision=hi)
        return jnp.log(jnp.maximum(mel, 1e-5))

    # ----- forward -------------------------------------------------------------
    def __call__(self, audio):
        """audio: (B, L) float32 -> (B, n_mels, T) float32."""
        y, T = self._pad_reflect(audio)
        B = y.shape[0]
        L_pad = y.shape[1]
        if T < 1:
            raise ValueError("audio too short for the given n_fft / hop_length")

        hop = self.hop_size
        r = self.r
        nf = self.n_freq_trunc
        n_mels = self.num_mels

        # --- frame-tile geometry ------------------------------------------------
        tile_t = min(self.tile_t, _round_up(T, 128))
        if B == 1 and tile_t >= 256 and _cdiv(T, tile_t) < 2:
            # Keep >= 2 parallel frame tiles so both v7x TensorCores get work
            # when there is only one batch element.
            tile_t = max(128, _round_up(_cdiv(T, 2), 128))
        chunk = 256 if tile_t % 256 == 0 else 128
        n_chunks = tile_t // chunk
        num_t = _cdiv(T, tile_t)

        # --- one-pass hop-strided relayout (replaces the old frames gather) -----
        # yto[b, m, t*W + s] = y[b, (t*tile_t + s)*hop + m]
        # => frame (t*tile_t + s), window sample j*hop + m == yto[b, m, t*W + s + j]
        halo = _round_up(max(r - 1, 1), 128)      # room for the j-shifts
        W = tile_t + halo                         # per-tile block width (lanes)
        need = ((num_t - 1) * tile_t + W) * hop
        if need > L_pad:
            y = jnp.pad(y, ((0, 0), (0, need - L_pad)))
        y16 = y.astype(jnp.bfloat16)
        segs = [
            y16[:, t * tile_t * hop : t * tile_t * hop + W * hop].reshape(B, W, hop)
            for t in range(num_t)
        ]
        yto = jnp.concatenate(segs, axis=1).transpose(0, 2, 1)   # (B, hop, num_t*W)

        kernel = _make_mel_kernel(hop, r, nf, chunk, n_chunks)
        out = pl.pallas_call(
            kernel,
            # Exact output shape: Pallas masks the ragged last frame tile, so no
            # post-kernel pad/slice pass over the output is needed.
            out_shape=jax.ShapeDtypeStruct((B, n_mels, T), jnp.float32),
            grid_spec=pltpu.PrefetchScalarGridSpec(
                num_scalar_prefetch=0,
                grid=(B, num_t),
                in_specs=[
                    pl.BlockSpec((None, hop, W), lambda b, t: (b, 0, t)),
                    pl.BlockSpec((2 * nf, self.n_fft_k), lambda b, t: (0, 0)),
                    pl.BlockSpec((n_mels, nf), lambda b, t: (0, 0)),
                ],
                out_specs=pl.BlockSpec((None, n_mels, tile_t), lambda b, t: (b, 0, t)),
            ),
            compiler_params=pltpu.CompilerParams(
                dimension_semantics=("parallel", "parallel"),
                vmem_limit_bytes=48 * 1024 * 1024,  # safe on v7x (64 MiB physical)
            ),
        )(yto, self.cossin, self.mel_w)
        return out


if __name__ == "__main__":
    key = jax.random.PRNGKey(0)
    k1, k2 = jax.random.split(key)

    def check(extractor, audio):
        mel = extractor(audio)
        jax.block_until_ready(mel)
        B, L = audio.shape
        p = (extractor.n_fft - extractor.hop_size) // 2
        T = 1 + (L + 2 * p - extractor.n_fft) // extractor.hop_size
        assert mel.shape == (B, extractor.num_mels, T), mel.shape
        assert bool(jnp.all(jnp.isfinite(mel)))
        # tight check vs. a reference using the same bf16-quantized inputs
        ref_q = extractor.reference_quantized(audio)
        err_q = float(jnp.max(jnp.abs(mel - ref_q)))
        assert err_q < 2e-2, ("quantized-ref max err", err_q)
        # looser check vs. the full-precision f32 pipeline (bf16 DFT quantization)
        ref_f = extractor.reference_f32(audio)
        err_f = float(jnp.mean(jnp.abs(mel - ref_f)))
        assert err_f < 5e-2, ("f32-ref mean err", err_f)

    # Small config (fast compile); exercises sub-128 hop and the partial tile.
    ex_small = MelSpectrogramFeatures1(
        sample_rate=24000, n_fft=64, hop_length=16, win_length=64,
        n_mels=16, mel_fmin=0, mel_fmax=8000)
    audio_small = jax.random.uniform(k1, (2, 256), dtype=jnp.float32,
                                     minval=-1.0, maxval=1.0)
    check(ex_small, audio_small)

    # Default module config on a short clip; exercises the aligned hop=256 path.
    ex_def = MelSpectrogramFeatures1()
    audio_def = jax.random.uniform(k2, (2, 4096), dtype=jnp.float32,
                                   minval=-1.0, maxval=1.0)
    check(ex_def, audio_def)

    print("KERNEL_OK")
</pallas_src>

<mosaic_0001>
module attributes {stable_mosaic.version = 11 : i64} {
  func.func @kernel(%arg0: i32, %arg1: i32, %arg2: memref<1x16x256xbf16, #tpu.memory_space<vmem>>, %arg3: memref<256x64xbf16, #tpu.memory_space<vmem>>, %arg4: memref<16x128xf32, #tpu.memory_space<vmem>>, %arg5: memref<1x16x128xf32, #tpu.memory_space<vmem>>) attributes {dimension_semantics = [#tpu.dimension_semantics<parallel>, #tpu.dimension_semantics<parallel>], iteration_bounds = array<i64: 2, 1>, scalar_prefetch = 0 : i64, scratch_operands = 0 : i64, tpu.core_type = #tpu.core_type<tc>, window_params = [{transform_indices = @transform_0, window_bounds = array<i64: 1, 16, 256>}, {pipeline_mode = #tpu.pipeline_mode<synchronous>, transform_indices = @transform_1, window_bounds = array<i64: 256, 64>}, {pipeline_mode = #tpu.pipeline_mode<synchronous>, transform_indices = @transform_2, window_bounds = array<i64: 16, 128>}, {transform_indices = @transform_3, window_bounds = array<i64: 1, 16, 128>}]} {
    %c0 = arith.constant 0 : index
    %c0_0 = arith.constant 0 : index
    %c0_1 = arith.constant 0 : index
    %0 = vector.load %arg2[%c0, %c0_0, %c0_1] : memref<1x16x256xbf16, #tpu.memory_space<vmem>>, vector<1x16x128xbf16>
    %1 = vector.shape_cast %0 : vector<1x16x128xbf16> to vector<16x128xbf16>
    %c0_2 = arith.constant 0 : index
    %c0_3 = arith.constant 0 : index
    %2 = vector.load %arg3[%c0_2, %c0_3] : memref<256x64xbf16, #tpu.memory_space<vmem>>, vector<256x16xbf16>
    %cst = arith.constant dense<0.000000e+00> : vector<256x128xf32>
    %3 = tpu.matmul %2, %1, %cst {dimension_numbers = #tpu.dot_dimension_numbers<[1], [0], [0], [1], [0, 0, 1, 1], [], []>} : vector<256x16xbf16>, vector<16x128xbf16>, vector<256x128xf32> -> vector<256x128xf32>
    %c0_4 = arith.constant 0 : index
    %c0_5 = arith.constant 0 : index
    %c1 = arith.constant 1 : index
    %4 = vector.load %arg2[%c0_4, %c0_5, %c1] : memref<1x16x256xbf16, #tpu.memory_space<vmem>>, vector<1x16x128xbf16>
    %5 = vector.shape_cast %4 : vector<1x16x128xbf16> to vector<16x128xbf16>
    %c0_6 = arith.constant 0 : index
    %c16 = arith.constant 16 : index
    %6 = vector.load %arg3[%c0_6, %c16] : memref<256x64xbf16, #tpu.memory_space<vmem>>, vector<256x16xbf16>
    %cst_7 = arith.constant dense<0.000000e+00> : vector<256x128xf32>
    %7 = tpu.matmul %6, %5, %cst_7 {dimension_numbers = #tpu.dot_dimension_numbers<[1], [0], [0], [1], [0, 0, 1, 1], [], []>} : vector<256x16xbf16>, vector<16x128xbf16>, vector<256x128xf32> -> vector<256x128xf32>
    %8 = arith.addf %3, %7 : vector<256x128xf32>
    %c0_8 = arith.constant 0 : index
    %c0_9 = arith.constant 0 : index
    %c2 = arith.constant 2 : index
    %9 = vector.load %arg2[%c0_8, %c0_9, %c2] : memref<1x16x256xbf16, #tpu.memory_space<vmem>>, vector<1x16x128xbf16>
    %10 = vector.shape_cast %9 : vector<1x16x128xbf16> to vector<16x128xbf16>
    %c0_10 = arith.constant 0 : index
    %c32 = arith.constant 32 : index
    %11 = vector.load %arg3[%c0_10, %c32] : memref<256x64xbf16, #tpu.memory_space<vmem>>, vector<256x16xbf16>
    %cst_11 = arith.constant dense<0.000000e+00> : vector<256x128xf32>
    %12 = tpu.matmul %11, %10, %cst_11 {dimension_numbers = #tpu.dot_dimension_numbers<[1], [0], [0], [1], [0, 0, 1, 1], [], []>} : vector<256x16xbf16>, vector<16x128xbf16>, vector<256x128xf32> -> vector<256x128xf32>
    %13 = arith.addf %8, %12 : vector<256x128xf32>
    %c0_12 = arith.constant 0 : index
    %c0_13 = arith.constant 0 : index
    %c3 = arith.constant 3 : index
    %14 = vector.load %arg2[%c0_12, %c0_13, %c3] : memref<1x16x256xbf16, #tpu.memory_space<vmem>>, vector<1x16x128xbf16>
    %15 = vector.shape_cast %14 : vector<1x16x128xbf16> to vector<16x128xbf16>
    %c0_14 = arith.constant 0 : index
    %c48 = arith.constant 48 : index
    %16 = vector.load %arg3[%c0_14, %c48] : memref<256x64xbf16, #tpu.memory_space<vmem>>, vector<256x16xbf16>
    %cst_15 = arith.constant dense<0.000000e+00> : vector<256x128xf32>
    %17 = tpu.matmul %16, %15, %cst_15 {dimension_numbers = #tpu.dot_dimension_numbers<[1], [0], [0], [1], [0, 0, 1, 1], [], []>} : vector<256x16xbf16>, vector<16x128xbf16>, vector<256x128xf32> -> vector<256x128xf32>
    %18 = arith.addf %13, %17 : vector<256x128xf32>
    %19 = vector.extract_strided_slice %18 {offsets = [0, 0], sizes = [128, 128], strides = [1, 1]} : vector<256x128xf32> to vector<128x128xf32>
    %20 = vector.extract_strided_slice %18 {offsets = [128, 0], sizes = [128, 128], strides = [1, 1]} : vector<256x128xf32> to vector<128x128xf32>
    %21 = arith.mulf %19, %19 : vector<128x128xf32>
    %22 = arith.mulf %20, %20 : vector<128x128xf32>
    %23 = arith.addf %21, %22 : vector<128x128xf32>
    %cst_16 = arith.constant 9.99999971E-10 : f32
    %24 = vector.broadcast %cst_16 : f32 to vector<128x128xf32>
    %25 = arith.addf %23, %24 : vector<128x128xf32>
    %26 = math.sqrt %25 : vector<128x128xf32>
    %c0_17 = arith.constant 0 : index
    %c0_18 = arith.constant 0 : index
    %27 = vector.load %arg4[%c0_17, %c0_18] : memref<16x128xf32, #tpu.memory_space<vmem>>, vector<16x128xf32>
    %cst_19 = arith.constant dense<0.000000e+00> : vector<16x128xf32>
    %28 = tpu.matmul %27, %26, %cst_19 {dimension_numbers = #tpu.dot_dimension_numbers<[1], [0], [0], [1], [0, 0, 1, 1], [], []>} : vector<16x128xf32>, vector<128x128xf32>, vector<16x128xf32> -> vector<16x128xf32>
    %cst_20 = arith.constant 9.99999974E-6 : f32
    %29 = vector.broadcast %cst_20 : f32 to vector<16x128xf32>
    %30 = arith.maximumf %28, %29 : vector<16x128xf32>
    %31 = math.log %30 : vector<16x128xf32>
    %c0_21 = arith.constant 0 : index
    %c0_22 = arith.constant 0 : index
    %c0_23 = arith.constant 0 : index
    %32 = vector.load %arg5[%c0_21, %c0_22, %c0_23] : memref<1x16x128xf32, #tpu.memory_space<vmem>>, vector<1x16x128xf32>
    %33 = vector.shape_cast %32 : vector<1x16x128xf32> to vector<16x128xf32>
    %34 = vector.shape_cast %31 : vector<16x128xf32> to vector<1x16x128xf32>
    tpu.vector_store %arg5[%c0_21, %c0_22, %c0_23], %34 {strides = array<i32>} : memref<1x16x128xf32, #tpu.memory_space<vmem>>, vector<1x16x128xf32>,
    return
  }
  func.func @transform_0(%arg0: i32, %arg1: i32) -> (i32, i32, i32) {
    %c0_i32 = arith.constant 0 : i32
    %c0_i32_0 = arith.constant 0 : i32
    return %arg0, %c0_i32, %arg1 : i32, i32, i32
  }
  func.func @transform_1(%arg0: i32, %arg1: i32) -> (i32, i32) {
    %c0_i32 = arith.constant 0 : i32
    %c0_i32_0 = arith.constant 0 : i32
    %c0_i32_1 = arith.constant 0 : i32
    return %c0_i32, %c0_i32_0 : i32, i32
  }
  func.func @transform_2(%arg0: i32, %arg1: i32) -> (i32, i32) {
    %c0_i32 = arith.constant 0 : i32
    %c0_i32_0 = arith.constant 0 : i32
    %c0_i32_1 = arith.constant 0 : i32
    return %c0_i32, %c0_i32_0 : i32, i32
  }
  func.func @transform_3(%arg0: i32, %arg1: i32) -> (i32, i32, i32) {
    %c0_i32 = arith.constant 0 : i32
    %c0_i32_0 = arith.constant 0 : i32
    return %arg0, %c0_i32, %arg1 : i32, i32, i32
  }
}

</mosaic_0001>

<bundles_post_ra>
// kernel: tpu_custom_call.1
= control target key start
LH: loop header
LB: loop body
LE: loop exit
PB: predicated region body
PF: predicated region fallthrough
CT: control target
= control target key end

     0   :  { %8 = vsyncpa [#allocation3], 0  ;;  %s2513_s0 = inlined_call_operand.vmem [shape: bf16[2,16,256], index: 0, kind: input, shape index: {}]   ;;  %s2514_s1 = inlined_call_operand.vmem [shape: bf16[256,64], index: 1, kind: input, shape index: {}]   ;;  %s2515_s2 = inlined_call_operand.vmem [shape: f32[16,128], index: 2, kind: input, shape index: {}]   ;;  %s2516_s3 = inlined_call_operand.hbm [shape: f32[2,16,16], index: 3, kind: output, shape index: {}]  }
   0x1   :  { %10 = vsyncpa [#allocation3 + $0x1], 0  ;;  %s1841_s12 = smov 0   ;;  %s1843_s13 = smov 0  }
   0x2   :  { %s1845_s14 = smov 0   ;;  %s1847_s15 = smov 0  }
   0x3   :  { %s1849_s16 = smov 0   ;;  %s1851_s17 = smov 0  }
   0x4 LB: > { %s1444_s18 = sadd.s32 4294967295, %s1811_s17   ;;  %s1445_s19 = sadd.s32 4294967294, %s1811_s17   ;;  %s1811_s17 = sphi %s1851_s17, %s16_s17   ;;  %s1807_s16 = sphi %s1849_s16, %s2523_s16   ;;  %s1803_s15 = sphi %s1847_s15, %s2522_s15   ;;  %s1799_s14 = sphi %s1845_s14, %s2521_s14   ;;  %s1795_s13 = sphi %s1843_s13, %s2520_s13   ;;  %s1791_s12 = sphi %s1841_s12, %s2519_s12  }
   0x5   : > { %s28_s20 = sadd.s32 1, %s1807_s16  ;;  %s107_s21 = sadd.s32 1, %s1799_s14 }
   0x6   : > { %p30_p0 = scmp.ge.s32.totalorder %s28_s20, 2  ;;  %p117_p1 = scmp.ne.s32.totalorder %s1799_s14, %s1795_s13 }
   0x7   : > { %p118_p2 = scmp.eq.s32.totalorder %s1444_s18, 1  ;;  %p123_p3 = scmp.ne.s32.totalorder %s1795_s13, %s1791_s12 }
   0x8   : > { %s2525_s20 = smov (%p30_p0, %s28_s20), 0  ;;  %p124_p5 = scmp.eq.s32.totalorder %s1445_s19, 1 }
   0x9   : > { %p1881_p4 = por %p118_p2, %p117_p1  ;;  %s102_s23 = ssub.s32 %s1807_s16, %s2525_s20 }
   0xa   : > { %p1448_p6 = scmp.ge.s32.totalorder %s1811_s17, 1  ;;  %p105_p7 = scmp.eq.s32.totalorder %s102_s23, 0 }
   0xb   : > { %p1888_p8 = por %p124_p5, %p123_p3  ;;  %p161_p9 = scmp.lt.s32.totalorder %s1811_s17, 3 }
   0xc   : > { %s1894_s25 = scalar_select %p105_p7, %s1799_s14, %s107_s21  }
   0xd   : > { %p162_p10 = pnand %p1448_p6, %p161_p9 }
   0xe   : > { %p190_p11 = scmp.lt.s32.totalorder (!%p162_p10), %s1803_s15, 1  ;;  %s1813_s4 = smov (!%p162_p10), 125  }
   0xf   : > { %165 = sbr.rel (%p162_p10) target bundleno = 742 (0x2e6), region = 32  ;;  %s1814_s5 = smov (!%p162_p10), 126  }
  0x10   : > { %s1815_s6 = smov (!%p162_p10), 127   ;;  %s1816_s9 = smov (!%p162_p10), 80  }
  0x11   : > { %s1817_s10 = smov (!%p162_p10), 96   ;;  %s1818_s11 = smov (!%p162_p10), 112  }
  0x12   : > { %s186_s23 = sand.u32 (!%p162_p10), 1, %s1795_s13  }
  0x13   : > { %s1350_s8 = scalar_lea.sflag (!%p162_p10), [#allocation3], %s186_s23 }
  0x14   : > { %s191_s26 = scalar_select %p190_p11, %s1803_s15, 1  ;;  %v1599_v6 = vld [vmem:[%s2514_s1] sm:$0xff]  ;;  %v1600_v7 = vld [vmem:[%s2514_s1 + $0x8] sm:$0xff]  ;;  %v1601_v8 = vld [vmem:[%s2514_s1 + $0x10] sm:$0xff]  ;;  %vm363_vm0 = vcmask 130048   ;;  %vm360_vm1 = vcmask 1039360  }
  0x15   : > { %v1928_v9 = vld [vmem:[%s2514_s1 + $0x18] sm:$0xff]  ;;  %v1939_v10 = vld [vmem:[%s2514_s1 + $0x20] sm:$0xff]  ;;  %v1950_v11 = vld [vmem:[%s2514_s1 + $0x28] sm:$0xff]  ;;  %vm680_vm2 = vcmask 1031168   ;;  %vm888_vm3 = vcmask 1022976  }
  0x16   : > { %s1597_s27 = sshll.u32 %s191_s26, 4  ;;  %v1961_v12 = vld [vmem:[%s2514_s1 + $0x30] sm:$0xff]  ;;  %v1974_v17 = vld [vmem:[%s2514_s1 + $0x38] sm:$0xff]  ;;  %v1986_v19 = vld [vmem:[%s2514_s1 + $0x40] sm:$0xff]  ;;  %s1449_s26 = sshll.u32 %s186_s23, 4 }
  0x17   : > { %s1901_s30 = scalar_lea.vmem %s2513_s0, %s1597_s27  ;;  %v1999_v24 = vld [vmem:[%s2514_s1 + $0x48] sm:$0xff]  ;;  %v2014_v32 = vld [vmem:[%s2514_s1 + $0x50] sm:$0xff]  ;;  %v2030_v36 = vld [vmem:[%s2514_s1 + $0x58] sm:$0xff]  ;;  %s1617_s27 = sshll.u32 %s1803_s15, 4 }
  0x18   : > { %v1518_v0 = vld [vmem:[%s1901_s30] sm:$0xf]  ;;  %v1616_v1 = vld [vmem:[%s1901_s30 + $0x4] sm:$0xf0]  ;;  %v1615_v3 = vld [vmem:[%s1901_s30 + $0x4] sm:$0xf] }
  0x19   : > { %v1519_v2 = vor.u32 %v1616_v1, %v1518_v0  ;;  %v1520_v4 = vld [vmem:[%s1901_s30 + $0x8] sm:$0xf0]  ;;  %v1542_v13 = vld [vmem:[%s1901_s30] sm:$0xf]  ;;  %v1598_v14 = vld [vmem:[%s1901_s30 + $0x4] sm:$0xf0] }
  0x1a   : > { %v1523_v5 = vor.u32 %v1615_v3, %v1520_v4  ;;  %v1543_v15 = vor.u32 %v1598_v14, %v1542_v13  ;;  %v2046_v40 = vld [vmem:[%s2514_s1 + $0x60] sm:$0xff]  ;;  %v2062_v44 = vld [vmem:[%s2514_s1 + $0x68] sm:$0xff]  ;;  %v2078_v48 = vld [vmem:[%s2514_s1 + $0x70] sm:$0xff] }
  0x1b   : > { %884 = vrot.lane.b32.xlu1 %v1519_v2, %s1813_s4  ;;  %676 = vrot.lane.b32.xlu0 %v1519_v2, %s1814_s5  ;;  %v2094_v52 = vld [vmem:[%s2514_s1 + $0x78] sm:$0xff] }
  0x1c   : > { %356 = vrot.lane.b32.xlu2 %v1519_v2, %s1815_s6  ;;  %562 = vmatpush.bf16.msra.mxu1 %v1543_v15 }
  0x1f   : > { %1544 = vmatmul.msk.bf16.vlgmr.msra.gmra.mxu1 %vm363_vm0, %v1599_v6 }
  0x23   : > { %886 = vrot.lane.b32.xlu1 %v1523_v5, %s1813_s4  ;;  %678 = vrot.lane.b32.xlu0 %v1523_v5, %s1814_s5  ;;  %s1362_s4 = scalar_lea.hbm %s2516_s3, %s1617_s27  ;;  %s188_s5 = scalar_lea.vmem [#allocation2], %s1449_s26 }
  0x24   : > { %358 = vrot.lane.b32.xlu2 %v1523_v5, %s1815_s6  ;;  %s1363_s6 = sshll.u32 %s188_s5, 4  ;;  %s1365_s7 = sshll.u32 %s1362_s4, 4  ;;  %s1364_s6 = int_to_ptr.vmem [resolvable:$true] %s1363_s6  ;;  %s1366_s7 = int_to_ptr.hbm [resolvable:$true] %s1365_s7 }
  0x25   : > { %s1747_s15 = sshra.s32 %s1366_s7, 4  ;;  %s1748_s15 = int_to_ptr.hbm [resolvable:$true] %s1747_s15 }
  0x26   : > { %s1749_s18 = scalar_lea.hbm %s1748_s15, 16  ;;  %p1754_p1 = scmp.lt.s32.totalorder %s1748_s15, %s2516_s3 }
  0x27   : > { %p1750_p12 = scmp.ne.s32.totalorder %s1748_s15, %s1749_s18 }
  0x29   : > { %p1751_p13 = pnand %p1750_p12, %p1881_p4 }
  0x2b   : > { %852 = vrot.lane.b32.xlu1 %v1599_v6, %s1816_s9  ;;  %644 = vrot.lane.b32.xlu0 %v1599_v6, %s1817_s10  ;;  %p1752_p0 = pneg %p1751_p13 }
  0x2c   : > { %316 = vrot.lane.b32.xlu2 %v1599_v6, %s1818_s11 }
  0x2f   : > { %1545 = vmatmul.msk.bf16.gmra.mxu1 %vm363_vm0, %v1600_v7 }
  0x33   : > { %854 = vrot.lane.b32.xlu1 %v1600_v7, %s1816_s9  ;;  %646 = vrot.lane.b32.xlu0 %v1600_v7, %s1817_s10 }
  0x34   : > { %318 = vrot.lane.b32.xlu2 %v1600_v7, %s1818_s11 }
  0x3b   : > { %856 = vrot.lane.b32.xlu1 %v1601_v8, %s1816_s9  ;;  %648 = vrot.lane.b32.xlu0 %v1601_v8, %s1817_s10 }
  0x3c   : > { %320 = vrot.lane.b32.xlu2 %v1601_v8, %s1818_s11 }
  0x3f   : > { %1546 = vmatmul.msk.bf16.gmra.mxu1 %vm363_vm0, %v1601_v8 }
  0x43   : > { %858 = vrot.lane.b32.xlu1 %v1928_v9, %s1816_s9  ;;  %650 = vrot.lane.b32.xlu0 %v1928_v9, %s1817_s10 }
  0x44   : > { %322 = vrot.lane.b32.xlu2 %v1928_v9, %s1818_s11 }
  0x4b   : > { %860 = vrot.lane.b32.xlu1 %v1939_v10, %s1816_s9  ;;  %652 = vrot.lane.b32.xlu0 %v1939_v10, %s1817_s10 }
  0x4c   : > { %324 = vrot.lane.b32.xlu2 %v1939_v10, %s1818_s11 }
  0x4f   : > { %1547 = vmatmul.msk.bf16.gmra.mxu1 %vm363_vm0, %v1928_v9 }
  0x53   : > { %862 = vrot.lane.b32.xlu1 %v1950_v11, %s1816_s9  ;;  %654 = vrot.lane.b32.xlu0 %v1950_v11, %s1817_s10 }
  0x54   : > { %326 = vrot.lane.b32.xlu2 %v1950_v11, %s1818_s11 }
  0x5b   : > { %864 = vrot.lane.b32.xlu1 %v1961_v12, %s1816_s9  ;;  %656 = vrot.lane.b32.xlu0 %v1961_v12, %s1817_s10 }
  0x5c   : > { %328 = vrot.lane.b32.xlu2 %v1961_v12, %s1818_s11 }
  0x5f   : > { %1548 = vmatmul.msk.bf16.gmra.mxu1 %vm363_vm0, %v1939_v10 }
  0x63   : > { %866 = vrot.lane.b32.xlu1 %v1974_v17, %s1816_s9  ;;  %658 = vrot.lane.b32.xlu0 %v1974_v17, %s1817_s10 }
  0x64   : > { %330 = vrot.lane.b32.xlu2 %v1974_v17, %s1818_s11 }
  0x6b   : > { %868 = vrot.lane.b32.xlu1 %v1986_v19, %s1816_s9  ;;  %660 = vrot.lane.b32.xlu0 %v1986_v19, %s1817_s10 }
  0x6c   : > { %332 = vrot.lane.b32.xlu2 %v1986_v19, %s1818_s11 }
  0x6f   : > { %1549 = vmatmul.msk.bf16.gmra.mxu1 %vm363_vm0, %v1950_v11 }
  0x73   : > { %870 = vrot.lane.b32.xlu1 %v1999_v24, %s1816_s9  ;;  %662 = vrot.lane.b32.xlu0 %v1999_v24, %s1817_s10 }
  0x74   : > { %334 = vrot.lane.b32.xlu2 %v1999_v24, %s1818_s11 }
  0x76   : > { %v357_v16 = vpop.permute.xlu2 %356 }
  0x7b   : > { %872 = vrot.lane.b32.xlu1 %v2014_v32, %s1816_s9  ;;  %664 = vrot.lane.b32.xlu0 %v2014_v32, %s1817_s10 }
  0x7c   : > { %336 = vrot.lane.b32.xlu2 %v2014_v32, %s1818_s11 }
  0x7e   : > { %v359_v18 = vpop.permute.xlu2 %358 }
  0x7f   : > { %v361_v20 = vsel %vm360_vm1, %v357_v16, %v359_v18  ;;  %1550 = vmatmul.msk.bf16.gmra.mxu1 %vm363_vm0, %v1961_v12 }
  0x80   : > { %419 = vmatpush.bf16.msra.mxu0 %v361_v20 }
  0x83   : > { %874 = vrot.lane.b32.xlu1 %v2030_v36, %s1816_s9  ;;  %666 = vrot.lane.b32.xlu0 %v2030_v36, %s1817_s10 }
  0x84   : > { %338 = vrot.lane.b32.xlu2 %v2030_v36, %s1818_s11 }
  0x86   : > { %v317_v21 = vpop.permute.xlu2 %316 }
  0x87   : > { %1524 = vmatmul.msk.bf16.vlgmr.msra.gmra.mxu0 %vm363_vm0, %v317_v21 }
  0x8b   : > { %876 = vrot.lane.b32.xlu1 %v2046_v40, %s1816_s9  ;;  %668 = vrot.lane.b32.xlu0 %v2046_v40, %s1817_s10 }
  0x8c   : > { %340 = vrot.lane.b32.xlu2 %v2046_v40, %s1818_s11 }
  0x8d   : > { %v885_v22 = vpop.permute.xlu1 %884  ;;  %v677_v23 = vpop.permute.xlu0 %676 }
  0x8e   : > { %v319_v25 = vpop.permute.xlu2 %318 }
  0x8f   : > { %1551 = vmatmul.msk.bf16.gmra.mxu1 %vm363_vm0, %v1974_v17 }
  0x93   : > { %878 = vrot.lane.b32.xlu1 %v2062_v44, %s1816_s9  ;;  %670 = vrot.lane.b32.xlu0 %v2062_v44, %s1817_s10 }
  0x94   : > { %342 = vrot.lane.b32.xlu2 %v2062_v44, %s1818_s11 }
  0x95   : > { %v887_v26 = vpop.permute.xlu1 %886  ;;  %v679_v27 = vpop.permute.xlu0 %678 }
  0x96   : > { %v681_v28 = vsel %vm680_vm2, %v677_v23, %v679_v27  ;;  %v889_v29 = vsel %vm888_vm3, %v885_v22, %v887_v26  ;;  %v321_v33 = vpop.permute.xlu2 %320 }
  0x97   : > { %738 = vmatpush.bf16.msra.mxu2 %v681_v28  ;;  %946 = vmatpush.bf16.msra.mxu3 %v889_v29 }
  0x98   : > { %1525 = vmatmul.msk.bf16.gmra.mxu0 %vm363_vm0, %v319_v25 }
  0x9b   : > { %880 = vrot.lane.b32.xlu1 %v2078_v48, %s1816_s9  ;;  %672 = vrot.lane.b32.xlu0 %v2078_v48, %s1817_s10 }
  0x9c   : > { %344 = vrot.lane.b32.xlu2 %v2078_v48, %s1818_s11  ;;  %v564_v54 = vpop.f32.mrf.mxu1 }
  0x9d   : > { %v853_v30 = vpop.permute.xlu1 %852  ;;  %v645_v31 = vpop.permute.xlu0 %644 }
  0x9e   : > { %1560 = vmatmul.msk.bf16.vlgmr.msra.gmra.mxu2 %vm363_vm0, %v645_v31  ;;  %1576 = vmatmul.msk.bf16.vlgmr.msra.gmra.mxu3 %vm363_vm0, %v853_v30  ;;  %v323_v37 = vpop.permute.xlu2 %322 }
  0x9f   : > { %1552 = vmatmul.msk.bf16.gmra.mxu1 %vm363_vm0, %v1986_v19 }
  0xa3   : > { %882 = vrot.lane.b32.xlu1 %v2094_v52, %s1816_s9  ;;  %674 = vrot.lane.b32.xlu0 %v2094_v52, %s1817_s10  ;;  %s1753_s9 = scalar_lea.hbm %s2516_s3, 32 }
  0xa4   : > { %346 = vrot.lane.b32.xlu2 %v2094_v52, %s1818_s11  ;;  %v566_v57 = vpop.f32.mrf.mxu1  ;;  %p1755_p2 = scmp.lt.s32.totalorder %s1753_s9, %s1749_s18 }
  0xa5   : > { %v855_v34 = vpop.permute.xlu1 %854  ;;  %v647_v35 = vpop.permute.xlu0 %646 }
  0xa6   : > { %v325_v41 = vpop.permute.xlu2 %324  ;;  %p1756_p3 = por %p1755_p2, %p1754_p1 }
  0xa8   : > { %1526 = vmatmul.msk.bf16.gmra.mxu0 %vm363_vm0, %v321_v33  ;;  %p1757_p5 = pnand %p1756_p3, %p1752_p0 }
  0xac   : > { %v569_v61 = vpop.f32.mrf.mxu1 }
  0xad   : > { %v857_v38 = vpop.permute.xlu1 %856  ;;  %v649_v39 = vpop.permute.xlu0 %648 }
  0xae   : > { %1561 = vmatmul.msk.bf16.gmra.mxu2 %vm363_vm0, %v647_v35  ;;  %1577 = vmatmul.msk.bf16.gmra.mxu3 %vm363_vm0, %v855_v34  ;;  %v327_v45 = vpop.permute.xlu2 %326 }
  0xaf   : > { %1553 = vmatmul.msk.bf16.gmra.mxu1 %vm363_vm0, %v1999_v24 }
  0xb4   : > { %v571_v2 = vpop.f32.mrf.mxu1 }
  0xb5   : > { %v859_v42 = vpop.permute.xlu1 %858  ;;  %v651_v43 = vpop.permute.xlu0 %650 }
  0xb6   : > { %v329_v49 = vpop.permute.xlu2 %328 }
  0xb8   : > { %1527 = vmatmul.msk.bf16.gmra.mxu0 %vm363_vm0, %v323_v37 }
  0xbc   : > { %v574_v6 = vpop.f32.mrf.mxu1 }
  0xbd   : > { %v861_v46 = vpop.permute.xlu1 %860  ;;  %v653_v47 = vpop.permute.xlu0 %652 }
  0xbe   : > { %1562 = vmatmul.msk.bf16.gmra.mxu2 %vm363_vm0, %v649_v39  ;;  %1578 = vmatmul.msk.bf16.gmra.mxu3 %vm363_vm0, %v857_v38  ;;  %v331_v53 = vpop.permute.xlu2 %330 }
  0xbf   : > { %1554 = vmatmul.msk.bf16.gmra.mxu1 %vm363_vm0, %v2014_v32 }
  0xc4   : > { %v576_v11 = vpop.f32.mrf.mxu1 }
  0xc5   : > { %v863_v50 = vpop.permute.xlu1 %862  ;;  %v655_v51 = vpop.permute.xlu0 %654 }
  0xc6   : > { %v333_v60 = vpop.permute.xlu2 %332 }
  0xc8   : > { %1528 = vmatmul.msk.bf16.gmra.mxu0 %vm363_vm0, %v325_v41 }
  0xcc   : > { %v579_v19 = vpop.f32.mrf.mxu1 }
  0xcd   : > { %v865_v55 = vpop.permute.xlu1 %864  ;;  %v657_v56 = vpop.permute.xlu0 %656 }
  0xce   : > { %1563 = vmatmul.msk.bf16.gmra.mxu2 %vm363_vm0, %v651_v43  ;;  %1579 = vmatmul.msk.bf16.gmra.mxu3 %vm363_vm0, %v859_v42  ;;  %v335_v4 = vpop.permute.xlu2 %334 }
  0xcf   : > { %1555 = vmatmul.msk.bf16.gmra.mxu1 %vm363_vm0, %v2030_v36 }
  0xd4   : > { %v581_v28 = vpop.f32.mrf.mxu1 }
  0xd5   : > { %v867_v62 = vpop.permute.xlu1 %866  ;;  %v659_v63 = vpop.permute.xlu0 %658 }
  0xd6   : > { %v337_v17 = vpop.permute.xlu2 %336 }
  0xd8   : > { %1529 = vmatmul.msk.bf16.gmra.mxu0 %vm363_vm0, %v327_v45 }
  0xdc   : > { %v584_v36 = vpop.f32.mrf.mxu1 }
  0xdd   : > { %v869_v7 = vpop.permute.xlu1 %868  ;;  %v661_v8 = vpop.permute.xlu0 %660 }
  0xde   : > { %1564 = vmatmul.msk.bf16.gmra.mxu2 %vm363_vm0, %v653_v47  ;;  %1580 = vmatmul.msk.bf16.gmra.mxu3 %vm363_vm0, %v861_v46  ;;  %v339_v34 = vpop.permute.xlu2 %338 }
  0xdf   : > { %1556 = vmatmul.msk.bf16.gmra.mxu1 %vm363_vm0, %v2046_v40 }
  0xe4   : > { %v586_v47 = vpop.f32.mrf.mxu1 }
  0xe5   : > { %v871_v23 = vpop.permute.xlu1 %870  ;;  %v663_v24 = vpop.permute.xlu0 %662 }
  0xe8   : > { %1530 = vmatmul.msk.bf16.gmra.mxu0 %vm363_vm0, %v329_v49 }
  0xed   : > { %v873_v41 = vpop.permute.xlu1 %872  ;;  %v665_v42 = vpop.permute.xlu0 %664 }
  0xee   : > { %1565 = vmatmul.msk.bf16.gmra.mxu2 %vm363_vm0, %v655_v51  ;;  %1581 = vmatmul.msk.bf16.gmra.mxu3 %vm363_vm0, %v863_v50 }
  0xef   : > { %1557 = vmatmul.msk.bf16.gmra.mxu1 %vm363_vm0, %v2062_v44 }
  0xf8   : > { %1531 = vmatmul.msk.bf16.gmra.mxu0 %vm363_vm0, %v331_v53 }
  0xfe   : > { %1566 = vmatmul.msk.bf16.gmra.mxu2 %vm363_vm0, %v657_v56  ;;  %1582 = vmatmul.msk.bf16.gmra.mxu3 %vm363_vm0, %v865_v55  ;;  %v341_v55 = vpop.permute.xlu2 %340  ;;  %v589_v56 = vpop.f32.mrf.mxu1 }
  0xff   : > { %1558 = vmatmul.msk.bf16.gmra.mxu1 %vm363_vm0, %v2078_v48 }
 0x104   : > { %v421_v58 = vpop.f32.mrf.mxu0 }
 0x105   : > { %v565_v59 = vadd.f32 %v564_v54, %v421_v58 }
 0x108   : > { %1532 = vmatmul.msk.bf16.gmra.mxu0 %vm363_vm0, %v333_v60  ;;  %v667_v60 = vpop.permute.xlu0 %666 }
 0x10c   : > { %v423_v0 = vpop.f32.mrf.mxu0 }
 0x10d   : > { %v567_v1 = vadd.f32 %v566_v57, %v423_v0  ;;  %v591_v0 = vpop.f32.mrf.mxu1 }
 0x10e   : > { %1567 = vmatmul.msk.bf16.gmra.mxu2 %vm363_vm0, %v659_v63  ;;  %1583 = vmatmul.msk.bf16.gmra.mxu3 %vm363_vm0, %v867_v62 }
 0x10f   : > { %1559 = vmatmul.msk.bf16.gmra.mxu1 %vm363_vm0, %v2094_v52 }
 0x115   : > { %v426_v3 = vpop.f32.mrf.mxu0  ;;  %v594_v44 = vpop.f32.mrf.mxu1 }
 0x116   : > { %v570_v5 = vadd.f32 %v569_v61, %v426_v3 }
 0x118   : > { %1533 = vmatmul.msk.bf16.gmra.mxu0 %vm363_vm0, %v335_v4 }
 0x11d   : > { %v428_v9 = vpop.f32.mrf.mxu0 }
 0x11e   : > { %1568 = vmatmul.msk.bf16.gmra.mxu2 %vm363_vm0, %v661_v8  ;;  %1584 = vmatmul.msk.bf16.gmra.mxu3 %vm363_vm0, %v869_v7  ;;  %v572_v10 = vadd.f32 %v571_v2, %v428_v9 }
 0x121   : > { %v740_v12 = vpop.f32.mrf.mxu2  ;;  %v948_v13 = vpop.f32.mrf.mxu3 }
 0x122   : > { %v820_v14 = vadd.f32 %v740_v12, %v565_v59  ;;  %v875_v59 = vpop.permute.xlu1 %874  ;;  %v669_v12 = vpop.permute.xlu0 %668 }
 0x124   : > { %v2117_v15 = vadd.f32 %v948_v13, %v820_v14 }
 0x125   : > { %v431_v16 = vpop.f32.mrf.mxu0 }
 0x126   : > { %v575_v18 = vadd.f32 %v574_v6, %v431_v16  ;;  %v343_v6 = vpop.permute.xlu2 %342 }
 0x128   : > { %1534 = vmatmul.msk.bf16.gmra.mxu0 %vm363_vm0, %v337_v17 }
 0x129   : > { %v742_v20 = vpop.f32.mrf.mxu2  ;;  %v950_v21 = vpop.f32.mrf.mxu3 }
 0x12a   : > { %v821_v22 = vadd.f32 %v742_v20, %v567_v1 }
 0x12c   : > { %v2122_v25 = vadd.f32 %v950_v21, %v821_v22 }
 0x12d   : > { %v433_v26 = vpop.f32.mrf.mxu0 }
 0x12e   : > { %1569 = vmatmul.msk.bf16.gmra.mxu2 %vm363_vm0, %v663_v24  ;;  %1585 = vmatmul.msk.bf16.gmra.mxu3 %vm363_vm0, %v871_v23  ;;  %v577_v27 = vadd.f32 %v576_v11, %v433_v26  ;;  %v877_v11 = vpop.permute.xlu1 %876  ;;  %v345_v24 = vpop.permute.xlu2 %344 }
 0x131   : > { %v745_v29 = vpop.f32.mrf.mxu2  ;;  %v953_v30 = vpop.f32.mrf.mxu3 }
 0x132   : > { %v822_v31 = vadd.f32 %v745_v29, %v570_v5 }
 0x134   : > { %v2126_v32 = vadd.f32 %v953_v30, %v822_v31  ;;  %v671_v31 = vpop.permute.xlu0 %670 }
 0x135   : > { %v436_v33 = vpop.f32.mrf.mxu0 }
 0x136   : > { %v580_v35 = vadd.f32 %v579_v19, %v436_v33  ;;  %v879_v30 = vpop.permute.xlu1 %878 }
 0x138   : > { %1535 = vmatmul.msk.bf16.gmra.mxu0 %vm363_vm0, %v339_v34 }
 0x139   : > { %v747_v37 = vpop.f32.mrf.mxu2  ;;  %v955_v38 = vpop.f32.mrf.mxu3 }
 0x13a   : > { %v823_v39 = vadd.f32 %v747_v37, %v572_v10 }
 0x13c   : > { %v2131_v43 = vadd.f32 %v955_v38, %v823_v39 }
 0x13d   : > { %v438_v45 = vpop.f32.mrf.mxu0 }
 0x13e   : > { %1570 = vmatmul.msk.bf16.gmra.mxu2 %vm363_vm0, %v665_v42  ;;  %1586 = vmatmul.msk.bf16.gmra.mxu3 %vm363_vm0, %v873_v41  ;;  %v582_v46 = vadd.f32 %v581_v28, %v438_v45  ;;  %v347_v45 = vpop.permute.xlu2 %346 }
 0x141   : > { %v750_v49 = vpop.f32.mrf.mxu2  ;;  %v958_v50 = vpop.f32.mrf.mxu3 }
 0x142   : > { %v824_v51 = vadd.f32 %v750_v49, %v575_v18  ;;  %v596_v18 = vpop.f32.mrf.mxu1 }
 0x144   : > { %v2135_v53 = vadd.f32 %v958_v50, %v824_v51  ;;  %v881_v51 = vpop.permute.xlu1 %880 }
 0x145   : > { %v441_v54 = vpop.f32.mrf.mxu0 }
 0x146   : > { %v585_v16 = vadd.f32 %v584_v36, %v441_v54  ;;  %v673_v54 = vpop.permute.xlu0 %672 }
 0x148   : > { %1536 = vmatmul.msk.bf16.gmra.mxu0 %vm363_vm0, %v341_v55 }
 0x149   : > { %v752_v40 = vpop.f32.mrf.mxu2  ;;  %v960_v57 = vpop.f32.mrf.mxu3 }
 0x14a   : > { %v825_v58 = vadd.f32 %v752_v40, %v577_v27  ;;  %v599_v26 = vpop.f32.mrf.mxu1 }
 0x14c   : > { %v2140_v61 = vadd.f32 %v960_v57, %v825_v58 }
 0x14d   : > { %v443_v62 = vpop.f32.mrf.mxu0 }
 0x14e   : > { %1571 = vmatmul.msk.bf16.gmra.mxu2 %vm363_vm0, %v667_v60  ;;  %1587 = vmatmul.msk.bf16.gmra.mxu3 %vm363_vm0, %v875_v59  ;;  %v587_v63 = vadd.f32 %v586_v47, %v443_v62 }
 0x151   : > { %v755_v1 = vpop.f32.mrf.mxu2  ;;  %v963_v2 = vpop.f32.mrf.mxu3 }
 0x152   : > { %v826_v3 = vadd.f32 %v755_v1, %v580_v35  ;;  %v601_v36 = vpop.f32.mrf.mxu1 }
 0x154   : > { %v2144_v4 = vadd.f32 %v963_v2, %v826_v3 }
 0x155   : > { %v446_v5 = vpop.f32.mrf.mxu0 }
 0x156   : > { %v590_v7 = vadd.f32 %v589_v56, %v446_v5 }
 0x158   : > { %1537 = vmatmul.msk.bf16.gmra.mxu0 %vm363_vm0, %v343_v6  ;;  %v883_v6 = vpop.permute.xlu1 %882 }
 0x159   : > { %v757_v8 = vpop.f32.mrf.mxu2  ;;  %v965_v9 = vpop.f32.mrf.mxu3 }
 0x15a   : > { %v827_v10 = vadd.f32 %v757_v8, %v582_v46  ;;  %v604_v52 = vpop.f32.mrf.mxu1 }
 0x15c   : > { %v2149_v13 = vadd.f32 %v965_v9, %v827_v10 }
 0x15d   : > { %v448_v14 = vpop.f32.mrf.mxu0 }
 0x15e   : > { %1572 = vmatmul.msk.bf16.gmra.mxu2 %vm363_vm0, %v669_v12  ;;  %1588 = vmatmul.msk.bf16.gmra.mxu3 %vm363_vm0, %v877_v11  ;;  %v592_v17 = vadd.f32 %v591_v0, %v448_v14 }
 0x161   : > { %v760_v19 = vpop.f32.mrf.mxu2  ;;  %v968_v20 = vpop.f32.mrf.mxu3 }
 0x162   : > { %v828_v21 = vadd.f32 %v760_v19, %v585_v16  ;;  %v606_v57 = vpop.f32.mrf.mxu1 }
 0x164   : > { %v2153_v22 = vadd.f32 %v968_v20, %v828_v21 }
 0x165   : > { %v451_v23 = vpop.f32.mrf.mxu0 }
 0x166   : > { %v595_v48 = vadd.f32 %v594_v44, %v451_v23 }
 0x168   : > { %1538 = vmatmul.msk.bf16.gmra.mxu0 %vm363_vm0, %v345_v24 }
 0x169   : > { %v762_v27 = vpop.f32.mrf.mxu2  ;;  %v970_v28 = vpop.f32.mrf.mxu3 }
 0x16a   : > { %v829_v29 = vadd.f32 %v762_v27, %v587_v63  ;;  %v609_v1 = vpop.f32.mrf.mxu1 }
 0x16c   : > { %v2158_v33 = vadd.f32 %v970_v28, %v829_v29 }
 0x16d   : > { %v453_v34 = vpop.f32.mrf.mxu0 }
 0x16e   : > { %1573 = vmatmul.msk.bf16.gmra.mxu2 %vm363_vm0, %v671_v31  ;;  %1589 = vmatmul.msk.bf16.gmra.mxu3 %vm363_vm0, %v879_v30  ;;  %v597_v35 = vadd.f32 %v596_v18, %v453_v34  ;;  %v1060_v34 = vmul.f32 %v2117_v15, %v2117_v15 }
 0x171   : > { %v765_v37 = vpop.f32.mrf.mxu2  ;;  %v973_v38 = vpop.f32.mrf.mxu3 }
 0x172   : > { %v830_v39 = vadd.f32 %v765_v37, %v590_v7  ;;  %v675_v7 = vpop.permute.xlu0 %674  ;;  %v611_v14 = vpop.f32.mrf.mxu1 }
 0x174   : > { %v2162_v41 = vadd.f32 %v973_v38, %v830_v39 }
 0x175   : > { %v456_v42 = vpop.f32.mrf.mxu0 }
 0x176   : > { %v600_v46 = vadd.f32 %v599_v26, %v456_v42 }
 0x178   : > { %1539 = vmatmul.msk.bf16.gmra.mxu0 %vm363_vm0, %v347_v45 }
 0x179   : > { %v767_v47 = vpop.f32.mrf.mxu2  ;;  %v975_v49 = vpop.f32.mrf.mxu3 }
 0x17a   : > { %v831_v50 = vadd.f32 %v767_v47, %v592_v17  ;;  %v614_v24 = vpop.f32.mrf.mxu1  ;;  %v1061_v47 = vmul.f32 %v2122_v25, %v2122_v25 }
 0x17c   : > { %v2165_v55 = vadd.f32 %v975_v49, %v831_v50 }
 0x17d   : > { %v458_v56 = vpop.f32.mrf.mxu0 }
 0x17e   : > { %1574 = vmatmul.msk.bf16.gmra.mxu2 %vm363_vm0, %v673_v54  ;;  %1590 = vmatmul.msk.bf16.gmra.mxu3 %vm363_vm0, %v881_v51  ;;  %v602_v40 = vadd.f32 %v601_v36, %v458_v56 }
 0x181   : > { %v770_v58 = vpop.f32.mrf.mxu2  ;;  %v978_v59 = vpop.f32.mrf.mxu3 }
 0x182   : > { %v832_v60 = vadd.f32 %v770_v58, %v595_v48  ;;  %v616_v37 = vpop.f32.mrf.mxu1 }
 0x184   : > { %v2169_v62 = vadd.f32 %v978_v59, %v832_v60  ;;  %v1062_v59 = vmul.f32 %v2126_v32, %v2126_v32 }
 0x185   : > { %v461_v63 = vpop.f32.mrf.mxu0 }
 0x186   : > { %v605_v0 = vadd.f32 %v604_v52, %v461_v63 }
 0x189   : > { %v772_v2 = vpop.f32.mrf.mxu2  ;;  %v980_v3 = vpop.f32.mrf.mxu3 }
 0x18a   : > { %v833_v5 = vadd.f32 %v772_v2, %v597_v35  ;;  %v619_v54 = vpop.f32.mrf.mxu1 }
 0x18c   : > { %v2171_v44 = vadd.f32 %v980_v3, %v833_v5 }
 0x18d   : > { %v463_v8 = vpop.f32.mrf.mxu0 }
 0x18e   : > { %1575 = vmatmul.msk.bf16.gmra.mxu2 %vm363_vm0, %v675_v7  ;;  %1591 = vmatmul.msk.bf16.gmra.mxu3 %vm363_vm0, %v883_v6  ;;  %v607_v9 = vadd.f32 %v606_v57, %v463_v8  ;;  %v1063_v7 = vmul.f32 %v2131_v43, %v2131_v43 }
 0x191   : > { %v775_v10 = vpop.f32.mrf.mxu2  ;;  %v983_v11 = vpop.f32.mrf.mxu3 }
 0x192   : > { %v834_v12 = vadd.f32 %v775_v10, %v600_v46  ;;  %v621_v3 = vpop.f32.mrf.mxu1 }
 0x194   : > { %v2175_v16 = vadd.f32 %v983_v11, %v834_v12 }
 0x195   : > { %v466_v17 = vpop.f32.mrf.mxu0 }
 0x196   : > { %v610_v18 = vadd.f32 %v609_v1, %v466_v17 }
 0x199   : > { %v777_v19 = vpop.f32.mrf.mxu2  ;;  %v985_v20 = vpop.f32.mrf.mxu3 }
 0x19a   : > { %v835_v21 = vadd.f32 %v777_v19, %v602_v40  ;;  %v1064_v19 = vmul.f32 %v2135_v53, %v2135_v53  ;;  %v1066_v53 = vmul.f32 %v2144_v4, %v2144_v4 }
 0x19c   : > { %v2177_v23 = vadd.f32 %v985_v20, %v835_v21 }
 0x19d   : > { %v468_v48 = vpop.f32.mrf.mxu0 }
 0x19e   : > { %v612_v26 = vadd.f32 %v611_v14, %v468_v48 }
 0x1a1   : > { %v780_v27 = vpop.f32.mrf.mxu2  ;;  %v988_v28 = vpop.f32.mrf.mxu3 }
 0x1a2   : > { %v836_v29 = vadd.f32 %v780_v27, %v605_v0 }
 0x1a4   : > { %v1044_v30 = vadd.f32 %v988_v28, %v836_v29  ;;  %v1065_v28 = vmul.f32 %v2140_v61, %v2140_v61  ;;  %v1067_v61 = vmul.f32 %v2149_v13, %v2149_v13 }
 0x1a5   : > { %v471_v31 = vpop.f32.mrf.mxu0 }
 0x1a6   : > { %v1076_v35 = vmul.f32 %v1044_v30, %v1044_v30  ;;  %v615_v36 = vadd.f32 %v614_v24, %v471_v31 }
 0x1a8   : > { %v2181_v38 = vadd.f32 %v1076_v35, %v1060_v34 }
 0x1a9   : > { %v782_v39 = vpop.f32.mrf.mxu2  ;;  %v990_v42 = vpop.f32.mrf.mxu3 }
 0x1aa   : > { %v837_v45 = vadd.f32 %v782_v39, %v607_v9 }
 0x1ac   : > { %v1045_v46 = vadd.f32 %v990_v42, %v837_v45 }
 0x1ad   : > { %v473_v52 = vpop.f32.mrf.mxu0 }
 0x1ae   : > { %v1077_v49 = vmul.f32 %v1045_v46, %v1045_v46  ;;  %v617_v50 = vadd.f32 %v616_v37, %v473_v52 }
 0x1b0   : > { %v2185_v51 = vadd.f32 %v1077_v49, %v1061_v47 }
 0x1b1   : > { %v785_v56 = vpop.f32.mrf.mxu2  ;;  %v993_v15 = vpop.f32.mrf.mxu3 }
 0x1b2   : > { %v838_v40 = vadd.f32 %v785_v56, %v610_v18  ;;  %v624_v18 = vpop.f32.mrf.mxu1 }
 0x1b4   : > { %v1046_v57 = vadd.f32 %v993_v15, %v838_v40 }
 0x1b5   : > { %v476_v58 = vpop.f32.mrf.mxu0 }
 0x1b6   : > { %v1078_v60 = vmul.f32 %v1046_v57, %v1046_v57  ;;  %v620_v63 = vadd.f32 %v619_v54, %v476_v58 }
 0x1b8   : > { %v2189_v0 = vadd.f32 %v1078_v60, %v1062_v59  ;;  %v1068_v59 = vmul.f32 %v2153_v22, %v2153_v22 }
 0x1b9   : > { %v787_v1 = vpop.f32.mrf.mxu2  ;;  %v995_v2 = vpop.f32.mrf.mxu3 }
 0x1ba   : > { %v839_v25 = vadd.f32 %v787_v1, %v612_v26  ;;  %v626_v45 = vpop.f32.mrf.mxu1 }
 0x1bc   : > { %v1047_v5 = vadd.f32 %v995_v2, %v839_v25 }
 0x1bd   : > { %v478_v6 = vpop.f32.mrf.mxu0 }
 0x1be   : > { %v1079_v8 = vmul.f32 %v1047_v5, %v1047_v5  ;;  %v622_v9 = vadd.f32 %v621_v3, %v478_v6 }
 0x1c0   : > { %v2193_v10 = vadd.f32 %v1079_v8, %v1063_v7 }
 0x1c1   : > { %v790_v11 = vpop.f32.mrf.mxu2  ;;  %v998_v12 = vpop.f32.mrf.mxu3 }
 0x1c2   : > { %v840_v32 = vadd.f32 %v790_v11, %v615_v36  ;;  %v629_v4 = vpop.f32.mrf.mxu1 }
 0x1c4   : > { %v1048_v14 = vadd.f32 %v998_v12, %v840_v32 }
 0x1c5   : > { %v481_v17 = vpop.f32.mrf.mxu0 }
 0x1c6   : > { %v1080_v20 = vmul.f32 %v1048_v14, %v1048_v14  ;;  %v625_v21 = vadd.f32 %v624_v18, %v481_v17 }
 0x1c8   : > { %v2197_v24 = vadd.f32 %v1080_v20, %v1064_v19 }
 0x1c9   : > { %v792_v48 = vpop.f32.mrf.mxu2  ;;  %v1000_v26 = vpop.f32.mrf.mxu3 }
 0x1ca   : > { %v841_v43 = vadd.f32 %v792_v48, %v617_v50  ;;  %v631_v3 = vpop.f32.mrf.mxu1 }
 0x1cc   : > { %v1049_v27 = vadd.f32 %v1000_v26, %v841_v43 }
 0x1cd   : > { %v483_v42 = vpop.f32.mrf.mxu0 }
 0x1ce   : > { %v1081_v29 = vmul.f32 %v1049_v27, %v1049_v27  ;;  %v627_v27 = vadd.f32 %v626_v45, %v483_v42  ;;  %v1071_v45 = vmul.f32 %v2165_v55, %v2165_v55 }
 0x1d0   : > { %v2201_v30 = vadd.f32 %v1081_v29, %v1065_v28 }
 0x1d1   : > { %v795_v31 = vpop.f32.mrf.mxu2  ;;  %v1003_v34 = vpop.f32.mrf.mxu3 }
 0x1d2   : > { %v842_v35 = vadd.f32 %v795_v31, %v620_v63  ;;  %v634_v7 = vpop.f32.mrf.mxu1 }
 0x1d4   : > { %v1050_v36 = vadd.f32 %v1003_v34, %v842_v35 }
 0x1d5   : > { %v486_v57 = vpop.f32.mrf.mxu0 }
 0x1d6   : > { %v1082_v37 = vmul.f32 %v1050_v36, %v1050_v36  ;;  %v630_v18 = vadd.f32 %v629_v4, %v486_v57 }
 0x1d8   : > { %v2205_v39 = vadd.f32 %v1082_v37, %v1066_v53 }
 0x1d9   : > { %v797_v46 = vpop.f32.mrf.mxu2  ;;  %v1005_v52 = vpop.f32.mrf.mxu3 }
 0x1da   : > { %v843_v47 = vadd.f32 %v797_v46, %v622_v9  ;;  %v636_v12 = vpop.f32.mrf.mxu1  ;;  %v1073_v46 = vmul.f32 %v2171_v44, %v2171_v44  ;;  %v2225_v44 = vadd.f32 1e-09, %v2185_v51 }
 0x1dc   : > { %v1051_v49 = vadd.f32 %v1005_v52, %v843_v47 }
 0x1dd   : > { %v488_v25 = vpop.f32.mrf.mxu0 }
 0x1de   : > { %v1083_v50 = vmul.f32 %v1051_v49, %v1051_v49  ;;  %v632_v22 = vadd.f32 %v631_v3, %v488_v25  ;;  %v1069_v25 = vmul.f32 %v2158_v33, %v2158_v33  ;;  %v2237_v3 = vadd.f32 1e-09, %v2193_v10 }
 0x1e0   : > { %v2209_v54 = vadd.f32 %v1083_v50, %v1067_v61  ;;  %v1072_v50 = vmul.f32 %v2169_v62, %v2169_v62  ;;  %v2230_v62 = vadd.f32 1e-09, %v2189_v0 }
 0x1e1   : > { %v800_v56 = vpop.f32.mrf.mxu2  ;;  %v1008_v15 = vpop.f32.mrf.mxu3 }
 0x1e2   : > { %v844_v40 = vadd.f32 %v800_v56, %v625_v21  ;;  %v639_v35 = vpop.f32.mrf.mxu1 }
 0x1e4   : > { %v1052_v58 = vadd.f32 %v1008_v15, %v844_v40  ;;  %v2222_v15 = vadd.f32 1e-09, %v2181_v38 }
 0x1e5   : > { %v491_v6 = vpop.f32.mrf.mxu0 }
 0x1e6   : > { %v1084_v60 = vmul.f32 %v1052_v58, %v1052_v58  ;;  %v635_v17 = vadd.f32 %v634_v7, %v491_v6  ;;  %1697 = vrsqrt.f32 %v2222_v15 }
 0x1e7   : > { %1699 = vrsqrt.f32 %v2225_v44 }
 0x1e8   : > { %v2213_v63 = vadd.f32 %v1084_v60, %v1068_v59  ;;  %v1070_v60 = vmul.f32 %v2162_v41, %v2162_v41  ;;  %v1074_v41 = vmul.f32 %v2175_v16, %v2175_v16  ;;  %1701 = vrsqrt.f32 %v2230_v62 }
 0x1e9   : > { %v802_v1 = vpop.f32.mrf.mxu2  ;;  %v1010_v2 = vpop.f32.mrf.mxu3  ;;  %v2253_v16 = vadd.f32 1e-09, %v2197_v24 }
 0x1ea   : > { %v845_v36 = vadd.f32 %v802_v1, %v627_v27 }
 0x1ec   : > { %v1053_v56 = vadd.f32 %v1010_v2, %v845_v36 }
 0x1ed   : > { %v493_v11 = vpop.f32.mrf.mxu0 }
 0x1ee   : > { %v637_v21 = vadd.f32 %v636_v12, %v493_v11  ;;  %v1085_v2 = vmul.f32 %v1053_v56, %v1053_v56 }
 0x1f0   : > { %v1101_v33 = vadd.f32 %v1085_v2, %v1069_v25 }
 0x1f1   : > { %v805_v13 = vpop.f32.mrf.mxu2  ;;  %v1013_v5 = vpop.f32.mrf.mxu3 }
 0x1f2   : > { %v846_v48 = vadd.f32 %v805_v13, %v630_v18 }
 0x1f4   : > { %v1054_v37 = vadd.f32 %v1013_v5, %v846_v48  ;;  %v641_v5 = vpop.f32.mrf.mxu1 }
 0x1f5   : > { %v496_v34 = vpop.f32.mrf.mxu0 }
 0x1f6   : > { %v640_v47 = vadd.f32 %v639_v35, %v496_v34  ;;  %v1086_v40 = vmul.f32 %v1054_v37, %v1054_v37 }
 0x1f8   : > { %v1102_v51 = vadd.f32 %v1086_v40, %v1070_v60 }
 0x1f9   : > { %v807_v8 = vpop.f32.mrf.mxu2  ;;  %v1015_v9 = vpop.f32.mrf.mxu3 }
 0x1fa   : > { %v847_v20 = vadd.f32 %v807_v8, %v632_v22 }
 0x1fc   : > { %v1055_v31 = vadd.f32 %v1015_v9, %v847_v20  ;;  %v2249_v9 = vadd.f32 1e-09, %v1102_v51 }
 0x1fd   : > { %v498_v13 = vpop.f32.mrf.mxu0 }
 0x1fe   : > { %v1087_v61 = vmul.f32 %v1055_v31, %v1055_v31  ;;  %v642_v10 = vadd.f32 %v641_v5, %v498_v13  ;;  %vm1251_vm13 = vcmp.eq.f32.partialorder %v2249_v9, inf  ;;  %vm1253_vm0 = vcmp.eq.f32.partialorder %v2249_v9, 0.0 }
 0x200   : > { %v1103_v1 = vadd.f32 %v1087_v61, %v1071_v45 }
 0x201   : > { %v810_v32 = vpop.f32.mrf.mxu2  ;;  %v1018_v14 = vpop.f32.mrf.mxu3 }
 0x202   : > { %v848_v19 = vadd.f32 %v810_v32, %v635_v17  ;;  %v2245_v7 = vadd.f32 1e-09, %v1103_v1  ;;  %v2261_v17 = vadd.f32 1e-09, %v2213_v63  ;;  %v1075_v63 = vmul.f32 %v2177_v23, %v2177_v23 }
 0x204   : > { %v1056_v28 = vadd.f32 %v1018_v14, %v848_v19  ;;  %v2258_v14 = vpop.eup %1697  ;;  %v2266_v19 = vadd.f32 1e-09, %v1101_v33  ;;  %vm1263_vm11 = vcmp.eq.f32.partialorder %v2245_v7, inf  ;;  %vm1265_vm14 = vcmp.eq.f32.partialorder %v2245_v7, 0.0 }
 0x205   : > { %v2264_v22 = vpop.eup %1699  ;;  %vm1227_vm1 = vcmp.eq.f32.partialorder %v2261_v17, inf }
 0x206   : > { %v1088_v52 = vmul.f32 %v1056_v28, %v1056_v28  ;;  %v2269_v24 = vpop.eup %1701  ;;  %v2286_v28 = vadd.f32 1e-09, %v2209_v54  ;;  %v1137_v5 = vmul.f32 %v2264_v22, %v2225_v44  ;;  %vm1239_vm15 = vcmp.eq.f32.partialorder %v2266_v19, inf }
 0x207   : > { %v1149_v13 = vmul.f32 %v2269_v24, %v2230_v62  ;;  %vm1241_vm2 = vcmp.eq.f32.partialorder %v2266_v19, 0.0 }
 0x208   : > { %v1104_v58 = vadd.f32 %v1088_v52, %v1072_v50  ;;  %vm1215_vm3 = vcmp.eq.f32.partialorder %v2286_v28, inf }
 0x209   : > { %v812_v26 = vpop.f32.mrf.mxu2  ;;  %v1020_v43 = vpop.f32.mrf.mxu3 }
 0x20a   : > { %v849_v29 = vadd.f32 %v812_v26, %v637_v21  ;;  %v2242_v0 = vadd.f32 1e-09, %v1104_v58  ;;  %v2272_v21 = vadd.f32 1e-09, %v2201_v30  ;;  %v2280_v26 = vadd.f32 1e-09, %v2205_v39 }
 0x20b   : > { %v1125_v39 = vmul.f32 %v2258_v14, %v2222_v15 }
 0x20c   : > { %v1057_v53 = vadd.f32 %v1020_v43, %v849_v29  ;;  %vm1275_vm9 = vcmp.eq.f32.partialorder %v2242_v0, inf  ;;  %vm1277_vm12 = vcmp.eq.f32.partialorder %v2242_v0, 0.0 }
 0x20d   : > { %v1126_v61 = vmul.f32 %v2258_v14, %v1125_v39 }
 0x20e   : > { %v1089_v49 = vmul.f32 %v1057_v53, %v1057_v53 }
 0x20f   : > { %v2333_v2 = vmul.f32 0.5, %v1126_v61 }
 0x210   : > { %v1105_v42 = vadd.f32 %v1089_v49, %v1073_v46 }
 0x211   : > { %v815_v57 = vpop.f32.mrf.mxu2  ;;  %v1023_v4 = vpop.f32.mrf.mxu3 }
 0x212   : > { %v850_v59 = vadd.f32 %v815_v57, %v640_v47  ;;  %v2232_v55 = vadd.f32 1e-09, %v1105_v42 }
 0x214   : > { %v1058_v38 = vadd.f32 %v1023_v4, %v850_v59  ;;  %1703 = vrsqrt.f32 %v2232_v55  ;;  %vm1287_vm7 = vcmp.eq.f32.partialorder %v2232_v55, inf  ;;  %vm1289_vm10 = vcmp.eq.f32.partialorder %v2232_v55, 0.0 }
 0x215   : > { %1705 = vrsqrt.f32 %v2237_v3 }
 0x216   : > { %v1090_v6 = vmul.f32 %v1058_v38, %v1058_v38  ;;  %1707 = vrsqrt.f32 %v2242_v0 }
 0x217   : > { %1709 = vrsqrt.f32 %v2245_v7 }
 0x218   : > { %v1106_v8 = vadd.f32 %v1090_v6, %v1074_v41 }
 0x219   : > { %v817_v11 = vpop.f32.mrf.mxu2  ;;  %v1025_v18 = vpop.f32.mrf.mxu3 }
 0x21a   : > { %v2255_v12 = vadd.f32 1e-09, %v1106_v8  ;;  %v851_v32 = vadd.f32 %v817_v11, %v642_v10  ;;  %v2275_v48 = vpop.eup %1703 }
 0x21b   : > { %v2283_v27 = vpop.eup %1705  ;;  %v1281_v23 = vmul.f32 %v2275_v48, %v2232_v55 }
 0x21c   : > { %v1059_v20 = vadd.f32 %v1025_v18, %v851_v32  ;;  %1711 = vrsqrt.f32 %v2255_v12  ;;  %v2289_v30 = vpop.eup %1707  ;;  %v1161_v51 = vmul.f32 %v2283_v27, %v2237_v3  ;;  %vm1299_vm5 = vcmp.eq.f32.partialorder %v2255_v12, inf }
 0x21d   : > { %1713 = vrsqrt.f32 %v2249_v9  ;;  %v2292_v31 = vpop.eup %1709  ;;  %v1269_v53 = vmul.f32 %v2289_v30, %v2242_v0  ;;  %v1282_v47 = vmul.f32 %v2275_v48, %v1281_v23  ;;  %vm1301_vm8 = vcmp.eq.f32.partialorder %v2255_v12, 0.0 }
 0x21e   : > { %v1091_v43 = vmul.f32 %v1059_v20, %v1059_v20  ;;  %1715 = vrsqrt.f32 %v2253_v16  ;;  %v1257_v49 = vmul.f32 %v2292_v31, %v2245_v7  ;;  %v1162_v39 = vmul.f32 %v2283_v27, %v1161_v51 }
 0x21f   : > { %1717 = vrsqrt.f32 %v2261_v17  ;;  %v1270_v40 = vmul.f32 %v2289_v30, %v1269_v53  ;;  %v1283_v59 = vmul.f32 0.5, %v1282_v47  ;;  %v1138_v53 = vmul.f32 %v2264_v22, %v1137_v5 }
 0x220   : > { %v1107_v29 = vadd.f32 %v1091_v43, %v1075_v63  ;;  %1719 = vrsqrt.f32 %v2266_v19  ;;  %v1258_v60 = vmul.f32 %v2292_v31, %v1257_v49 }
 0x221   : > { %1721 = vrsqrt.f32 %v2272_v21  ;;  %v1271_v33 = vmul.f32 0.5, %v1270_v40  ;;  %v1284_v63 = vsub.f32 1.5, %v1283_v59 }
 0x222   : > { %v1712_v34 = vpop.eup %1711  ;;  %v2299_v54 = vadd.f32 1e-09, %v1107_v29  ;;  %1723 = vrsqrt.f32 %v2280_v26  ;;  %v1259_v43 = vmul.f32 0.5, %v1258_v60 }
 0x223   : > { %v2302_v35 = vpop.eup %1713  ;;  %v1293_v36 = vmul.f32 %v1712_v34, %v2255_v12  ;;  %1725 = vrsqrt.f32 %v2286_v28  ;;  %v1272_v49 = vsub.f32 1.5, %v1271_v33  ;;  %v1285_v60 = vmul.f32 %v2275_v48, %v1284_v63 }
 0x224   : > { %v2308_v37 = vpop.eup %1715  ;;  %1727 = vrsqrt.f32 %v2299_v54  ;;  %v1245_v56 = vmul.f32 %v2302_v35, %v2249_v9  ;;  %vm1311_vm4 = vcmp.eq.f32.partialorder %v2299_v54, inf  ;;  %vm1313_vm6 = vcmp.eq.f32.partialorder %v2299_v54, 0.0 }
 0x225   : > { %v2311_v46 = vpop.eup %1717  ;;  %v1294_v52 = vmul.f32 %v1712_v34, %v1293_v36  ;;  %v1173_v10 = vmul.f32 %v2308_v37, %v2253_v16  ;;  %v1150_v36 = vmul.f32 %v2269_v24, %v1149_v13  ;;  %v2361_v13 = vmul.f32 0.5, %v1162_v39 }
 0x226   : > { %v2317_v50 = vpop.eup %1719  ;;  %v1221_v4 = vmul.f32 %v2311_v46, %v2261_v17  ;;  %v1246_v25 = vmul.f32 %v2302_v35, %v1245_v56  ;;  %v1273_v33 = vmul.f32 %v2289_v30, %v1272_v49  ;;  %v1290_v49 = vand.u32 2147483648, %v2232_v55 }
 0x227   : > { %v2321_v42 = vpop.eup %1721  ;;  %v1295_v45 = vmul.f32 0.5, %v1294_v52  ;;  %v1233_v1 = vmul.f32 %v2317_v50, %v2266_v19  ;;  %v1174_v61 = vmul.f32 %v2308_v37, %v1173_v10  ;;  %v2363_v5 = vmul.f32 0.5, %v1150_v36 }
 0x228   : > { %v2324_v57 = vpop.eup %1723  ;;  %v1222_v8 = vmul.f32 %v2311_v46, %v1221_v4  ;;  %v1185_v18 = vmul.f32 %v2321_v42, %v2272_v21  ;;  %v1247_v23 = vmul.f32 0.5, %v1246_v25  ;;  %v1274_v39 = vmul.f32 %v1273_v33, %v2242_v0 }
 0x229   : > { %v2328_v58 = vpop.eup %1725  ;;  %v1296_v6 = vsub.f32 1.5, %v1295_v45  ;;  %v1197_v32 = vmul.f32 %v2324_v57, %v2280_v26  ;;  %v1234_v29 = vmul.f32 %v2317_v50, %v1233_v1  ;;  %v1260_v1 = vsub.f32 1.5, %v1259_v43 }
 0x22a   : > { %v1728_v38 = vpop.eup %1727  ;;  %v1209_v11 = vmul.f32 %v2328_v58, %v2286_v28  ;;  %v1223_v56 = vmul.f32 0.5, %v1222_v8  ;;  %v1186_v4 = vmul.f32 %v2321_v42, %v1185_v18  ;;  %v1248_v51 = vsub.f32 1.5, %v1247_v23 }
 0x22b   : > { %v1305_v41 = vmul.f32 %v1728_v38, %v2299_v54  ;;  %v1297_v47 = vmul.f32 %v1712_v34, %v1296_v6  ;;  %v1198_v40 = vmul.f32 %v2324_v57, %v1197_v32  ;;  %v1235_v25 = vmul.f32 0.5, %v1234_v29 }
 0x22c   : > { %v1210_v45 = vmul.f32 %v2328_v58, %v1209_v11  ;;  %v2365_v34 = vmul.f32 0.5, %v1138_v53  ;;  %v2369_v10 = vmul.f32 0.5, %v1174_v61  ;;  %v1224_v8 = vsub.f32 1.5, %v1223_v56 }
 0x22d   : > { %v1306_v20 = vmul.f32 %v1728_v38, %v1305_v41  ;;  %v1298_v6 = vmul.f32 %v1297_v47, %v2255_v12  ;;  %v1199_v32 = vmul.f32 0.5, %v1198_v40  ;;  %v2371_v48 = vmul.f32 0.5, %v1186_v4 }
 0x22e   : > { %v1211_v11 = vmul.f32 0.5, %v1210_v45  ;;  %v1261_v63 = vmul.f32 %v2292_v31, %v1260_v1  ;;  %v1236_v43 = vsub.f32 1.5, %v1235_v25  ;;  %v1249_v30 = vmul.f32 %v2302_v35, %v1248_v51 }
 0x22f   : > { %v1307_v52 = vmul.f32 0.5, %v1306_v20  ;;  %v1286_v20 = vmul.f32 %v1285_v60, %v2232_v55  ;;  %v1300_v23 = vsel %vm1299_vm5, %v2255_v12, %v1298_v6  ;;  %v1302_v31 = vand.u32 2147483648, %v2255_v12 }
 0x230   : > { %v1212_v53 = vsub.f32 1.5, %v1211_v11  ;;  %v1200_v61 = vsub.f32 1.5, %v1199_v32  ;;  %v1276_v56 = vsel %vm1275_vm9, %v2242_v0, %v1274_v39  ;;  %v1250_v12 = vmul.f32 %v1249_v30, %v2249_v9 }
 0x231   : > { %v1308_v59 = vsub.f32 1.5, %v1307_v52  ;;  %v1288_v35 = vsel %vm1287_vm7, %v2232_v55, %v1286_v20  ;;  %v1262_v52 = vmul.f32 %v1261_v63, %v2245_v7  ;;  %v1303_v47 = vsel %vm1301_vm8, %v1302_v31, %v1300_v23 }
 0x232   : > { %v1225_v45 = vmul.f32 %v2311_v46, %v1224_v8  ;;  %v1291_v40 = vsel %vm1289_vm10, %v1290_v49, %v1288_v35  ;;  %v1278_v4 = vand.u32 2147483648, %v2242_v0  ;;  %v1213_v60 = vmul.f32 %v2328_v58, %v1212_v53 }
 0x233   : > { %v1309_v41 = vmul.f32 %v1728_v38, %v1308_v59  ;;  %v1314_v38 = vand.u32 2147483648, %v2299_v54  ;;  %v1264_v59 = vsel %vm1263_vm11, %v2245_v7, %v1262_v52  ;;  %v1266_v46 = vand.u32 2147483648, %v2245_v7 }
 0x234   : > { %v1279_v1 = vsel %vm1277_vm12, %v1278_v4, %v1276_v56  ;;  %v1176_v25 = vsub.f32 1.5, %v2369_v10  ;;  %v1252_v51 = vsel %vm1251_vm13, %v2249_v9, %v1250_v12  ;;  %v1226_v0 = vmul.f32 %v1225_v45, %v2261_v17  ;;  %v1317_v4 = vld [vmem:[%s2515_s2 + $0x8] sm:$0xff] }
 0x235   : > { %v1310_v18 = vmul.f32 %v1309_v41, %v2299_v54  ;;  %v1201_v41 = vmul.f32 %v2324_v57, %v1200_v61  ;;  %v1267_v6 = vsel %vm1265_vm14, %v1266_v46, %v1264_v59  ;;  %v1254_v58 = vand.u32 2147483648, %v2249_v9 }
 0x236   : > { %v1164_v33 = vsub.f32 1.5, %v2361_v13  ;;  %v1214_v7 = vmul.f32 %v1213_v60, %v2286_v28  ;;  %v1242_v57 = vand.u32 2147483648, %v2266_v19  ;;  %v1152_v32 = vsub.f32 1.5, %v2363_v5 }
 0x237   : > { %v1312_v29 = vsel %vm1311_vm4, %v2299_v54, %v1310_v18  ;;  %v1237_v54 = vmul.f32 %v2317_v50, %v1236_v43  ;;  %v1188_v50 = vsub.f32 1.5, %v2371_v48  ;;  %v1255_v11 = vsel %vm1253_vm0, %v1254_v58, %v1252_v51 }
 0x238   : > { %v1315_v36 = vsel %vm1313_vm6, %v1314_v38, %v1312_v29  ;;  %v1228_v13 = vsel %vm1227_vm1, %v2261_v17, %v1226_v0  ;;  %v1202_v9 = vmul.f32 %v1201_v41, %v2280_v26  ;;  %v1177_v48 = vmul.f32 %v2308_v37, %v1176_v25 }
 0x239   : > { %1318 = vmatpush.msrb.mxu0 %v1315_v36  ;;  %1618 = vmatpush.msrb.mxu1 %v1315_v36  ;;  %v1238_v55 = vmul.f32 %v1237_v54, %v2266_v19  ;;  %v1189_v8 = vmul.f32 %v2321_v42, %v1188_v50  ;;  %v1230_v42 = vand.u32 2147483648, %v2261_v17  ;;  %v1140_v20 = vsub.f32 1.5, %v2365_v34 }
 0x23a   : > { %vm1229_vm4 = vcmp.eq.f32.partialorder %v2261_v17, 0.0  ;;  %v1216_v5 = vsel %vm1215_vm3, %v2286_v28, %v1214_v7  ;;  %v1165_v63 = vmul.f32 %v2283_v27, %v1164_v33  ;;  %v1218_v37 = vand.u32 2147483648, %v2286_v28 }
 0x23b   : > { %1319 = vmatpush.msrb.mxu0 %v1303_v47  ;;  %1619 = vmatpush.msrb.mxu1 %v1303_v47  ;;  %v1240_v10 = vsel %vm1239_vm15, %v2266_v19, %v1238_v55  ;;  %v1190_v19 = vmul.f32 %v1189_v8, %v2272_v21  ;;  %v1231_v43 = vsel %vm1229_vm4, %v1230_v42, %v1228_v13  ;;  %vm1203_vm5 = vcmp.eq.f32.partialorder %v2280_v26, inf }
 0x23c   : > { %v1243_v18 = vsel %vm1241_vm2, %v1242_v57, %v1240_v10  ;;  %v1128_v38 = vsub.f32 1.5, %v2333_v2  ;;  %vm1217_vm6 = vcmp.eq.f32.partialorder %v2286_v28, 0.0  ;;  %v1204_v34 = vsel %vm1203_vm5, %v2280_v26, %v1202_v9 }
 0x23d   : > { %1320 = vmatpush.msrb.mxu0 %v1291_v40  ;;  %1620 = vmatpush.msrb.mxu1 %v1291_v40  ;;  %v1178_v17 = vmul.f32 %v1177_v48, %v2253_v16  ;;  %v1153_v30 = vmul.f32 %v2269_v24, %v1152_v32  ;;  %v1219_v29 = vsel %vm1217_vm6, %v1218_v37, %v1216_v5  ;;  %v1206_v27 = vand.u32 2147483648, %v2280_v26 }
 0x23e   : > { %vm1191_vm7 = vcmp.eq.f32.partialorder %v2272_v21, inf  ;;  %vm1205_vm8 = vcmp.eq.f32.partialorder %v2280_v26, 0.0  ;;  %v1166_v23 = vmul.f32 %v1165_v63, %v2237_v3  ;;  %v1141_v28 = vmul.f32 %v2264_v22, %v1140_v20 }
 0x23f   : > { %1321 = vmatpush.msrb.mxu0 %v1279_v1  ;;  %1621 = vmatpush.msrb.mxu1 %v1279_v1  ;;  %v1192_v2 = vsel %vm1191_vm7, %v2272_v21, %v1190_v19  ;;  %v1207_v39 = vsel %vm1205_vm8, %v1206_v27, %v1204_v34  ;;  %v1194_v36 = vand.u32 2147483648, %v2272_v21  ;;  %vm1179_vm9 = vcmp.eq.f32.partialorder %v2253_v16, inf }
 0x240   : > { %vm1193_vm10 = vcmp.eq.f32.partialorder %v2272_v21, 0.0  ;;  %v1180_v24 = vsel %vm1179_vm9, %v2253_v16, %v1178_v17  ;;  %v1154_v31 = vmul.f32 %v1153_v30, %v2230_v62  ;;  %v1129_v26 = vmul.f32 %v2258_v14, %v1128_v38 }
 0x241   : > { %1322 = vmatpush.msrb.mxu0 %v1267_v6  ;;  %1622 = vmatpush.msrb.mxu1 %v1267_v6  ;;  %v1195_v53 = vsel %vm1193_vm10, %v1194_v36, %v1192_v2  ;;  %v1182_v35 = vand.u32 2147483648, %v2253_v16  ;;  %vm1167_vm11 = vcmp.eq.f32.partialorder %v2237_v3, inf  ;;  %vm1181_vm12 = vcmp.eq.f32.partialorder %v2253_v16, 0.0 }
 0x242   : > { %v1168_v22 = vsel %vm1167_vm11, %v2237_v3, %v1166_v23  ;;  %v1142_v52 = vmul.f32 %v1141_v28, %v2225_v44  ;;  %v1170_v54 = vand.u32 2147483648, %v2237_v3  ;;  %vm1155_vm13 = vcmp.eq.f32.partialorder %v2230_v62, inf }
 0x243   : > { %1323 = vmatpush.msrb.mxu0 %v1255_v11  ;;  %1623 = vmatpush.msrb.mxu1 %v1255_v11  ;;  %v1183_v21 = vsel %vm1181_vm12, %v1182_v35, %v1180_v24  ;;  %vm1169_vm14 = vcmp.eq.f32.partialorder %v2237_v3, 0.0  ;;  %v1156_v14 = vsel %vm1155_vm13, %v2230_v62, %v1154_v31  ;;  %v1130_v47 = vmul.f32 %v1129_v26, %v2222_v15 }
 0x244   : > { %v1171_v49 = vsel %vm1169_vm14, %v1170_v54, %v1168_v22  ;;  %v1158_v16 = vand.u32 2147483648, %v2230_v62  ;;  %vm1143_vm15 = vcmp.eq.f32.partialorder %v2225_v44, inf  ;;  %vm1157_vm0 = vcmp.eq.f32.partialorder %v2230_v62, 0.0  ;;  %v1316_v62 = vld [vmem:[%s2515_s2] sm:$0xff] }
 0x245   : > { %1324 = vmatpush.msrb.mxu0 %v1243_v18  ;;  %1624 = vmatpush.msrb.mxu1 %v1243_v18  ;;  %v1144_v61 = vsel %vm1143_vm15, %v2225_v44, %v1142_v52  ;;  %v1146_v12 = vand.u32 2147483648, %v2225_v44  ;;  %vm1131_vm1 = vcmp.eq.f32.partialorder %v2222_v15, inf  ;;  %vm1145_vm2 = vcmp.eq.f32.partialorder %v2225_v44, 0.0 }
 0x246   : > { %v1159_v56 = vsel %vm1157_vm0, %v1158_v16, %v1156_v14  ;;  %v1132_v3 = vsel %vm1131_vm1, %v2222_v15, %v1130_v47  ;;  %v1134_v40 = vand.u32 2147483648, %v2222_v15  ;;  %vm1133_vm3 = vcmp.eq.f32.partialorder %v2222_v15, 0.0 }
 0x247   : > { %1325 = vmatpush.msrb.mxu0 %v1231_v43  ;;  %1625 = vmatpush.msrb.mxu1 %v1231_v43  ;;  %v1147_v45 = vsel %vm1145_vm2, %v1146_v12, %v1144_v61 }
 0x248   : > { %v1135_v50 = vsel %vm1133_vm3, %v1134_v40, %v1132_v3 }
 0x249   : > { %1326 = vmatpush.msrb.mxu0 %v1219_v29  ;;  %1626 = vmatpush.msrb.mxu1 %v1219_v29 }
 0x24b   : > { %1327 = vmatpush.msrb.mxu0 %v1207_v39  ;;  %1627 = vmatpush.msrb.mxu1 %v1207_v39 }
 0x24d   : > { %1328 = vmatpush.msrb.mxu0 %v1195_v53  ;;  %1628 = vmatpush.msrb.mxu1 %v1195_v53 }
 0x24f   : > { %1329 = vmatpush.msrb.mxu0 %v1183_v21  ;;  %1629 = vmatpush.msrb.mxu1 %v1183_v21 }
 0x251   : > { %1330 = vmatpush.msrb.mxu0 %v1171_v49  ;;  %1630 = vmatpush.msrb.mxu1 %v1171_v49 }
 0x253   : > { %1331 = vmatpush.msrb.mxu0 %v1159_v56  ;;  %1631 = vmatpush.msrb.mxu1 %v1159_v56 }
 0x255   : > { %1332 = vmatpush.msrb.mxu0 %v1147_v45  ;;  %1632 = vmatpush.msrb.mxu1 %v1147_v45 }
 0x257   : > { %1333 = vmatpush.msrb.mxu0 %v1135_v50  ;;  %1633 = vmatpush.msrb.mxu1 %v1135_v50 }
 0x258   : > { %1334 = vmatmul.f32.vlgmr.msrb.gmra.mxu0 %v1316_v62  ;;  %1337 = vmatmul.f32.vlgmr.msrb.gmra.mxu1 %v1317_v4 }
 0x2d5   : > { %v1335_v44 = vpop.f32.mrf.mxu0  ;;  %v1338_v59 = vpop.f32.mrf.mxu1 }
 0x2d6   : > { %v1341_v55 = vmax.f32 %v1335_v44, 1e-05  ;;  %v1342_v60 = vmax.f32 %v1338_v59, 1e-05 }
 0x2d8   : > { %1729 = vlog2.f32 %v1341_v55 }
 0x2d9   : > { %1731 = vlog2.f32 %v1342_v60 }
 0x2de   : > { %v1730_v15 = vpop.eup %1729 }
 0x2df   : > { %v1732_v1 = vpop.eup %1731  ;;  %v1344_v46 = vmul.f32 0.6931472, %v1730_v15 }
 0x2e0   : > { %v1346_v25 = vmul.f32 0.6931472, %v1732_v1 }
 0x2e1   : > { %1347 = vst [vmem:[%s188_s5] sm:$0xff] %v1344_v46 }
 0x2e2   : > { %1348 = vst [vmem:[%s188_s5 + $0x8] sm:$0xff] %v1346_v25 }
 0x2e3   : > { %1760 = shalt.err (!%p1757_p5)
}
 0x2e4   : > { %s1819_s21 = smov 128   ;;  %s1820_s23 = smov 8  }
 0x2e5   : > { %1634 = dma.vmem_to_hbm [thread:$0]  (%p1881_p4), %s1364_s6, 256, %s1366_s7, %s1350_s8, %s1819_s21, %s1819_s21, %s1820_s23  }
 0x2e6 PF: > { %p1640_p6 = scmp.ge.s32.totalorder %s1811_s17, 2  ;;  %s1380_s26 = sand.u32 1, %s1791_s12  }
 0x2e7   : > { %s1381_s27 = scalar_lea.sflag [#allocation3], %s1380_s26 }
 0x2e8   : > { %p1637_p7 = pnand %p1640_p6, %p1888_p8 }
 0x2ea   : > { %p1638_p9 = pneg %p1637_p7 }
 0x2ec   : > { %1786 = dma.done.wait (%p1638_p9), %s1381_s27, 256  }
 0x2ed   : > { %1788 = vsyncadd (%p1638_p9), %s1381_s27, 4294967040  ;;  %s16_s17 = sadd.s32 1, %s1811_s17   ;;  %s2519_s12 = smov %s1795_s13 }
 0x2ee   : > { %p13_p10 = scmp.ge.s32.totalorder %s16_s17, 4   ;;  %s2520_s13 = smov %s1799_s14 }
 0x2ef   : > { %s2521_s14 = smov %s1894_s25  ;;  %s2522_s15 = smov %s1807_s16 }
 0x2f0   : > { %s2523_s16 = smov %s2525_s20  ;;  %15 = sbr.rel (!%p13_p10) target bundleno = 4 (0x4), region = 67 }
 0x2f5   :  { %1387 = vsyncpa [#allocation3], 1 }
 0x2f6   :  { %1389 = vsyncpa [#allocation3 + $0x1], 1 }

</bundles_post_ra>
